<compile_context>
chip_gen: v7x
topology: tpu7x:2x2x1
jax: 0.10.0
libtpu: 0.0.40
codegen_flags: <defaults>
</compile_context>

<pallas_src>
import functools

import jax
import jax.numpy as jnp
from jax.experimental import pallas as pl
from jax.experimental.pallas import tpu as pltpu


def _round_up(n, m):
    return ((n + m - 1) // m) * m


def _mlp_kernel(x_ref, w1_ref, b1_ref, w2_ref, b2_ref, w3_ref, b3_ref, o_ref):
    # Hot path: 3 MXU matmuls (f32 accumulation) + VPU ReLU / bias adds.
    cdt = w1_ref.dtype                      # compute dtype (f32 or bf16)
    x = x_ref[...]
    b1 = b1_ref[...]                        # biases read once (f32)
    b2 = b2_ref[...]
    b3 = b3_ref[...]

    h1 = jnp.dot(x, w1_ref[...], preferred_element_type=jnp.float32) + b1
    h1 = jnp.maximum(h1, 0.0).astype(cdt)

    h2 = jnp.dot(h1, w2_ref[...], preferred_element_type=jnp.float32) + b2
    h2 = jnp.maximum(h2, 0.0).astype(cdt)

    out = jnp.dot(h2, w3_ref[...], preferred_element_type=jnp.float32) + b3
    o_ref[...] = out.astype(o_ref.dtype)


@functools.partial(jax.jit, static_argnames=("batch_tile", "compute_dtype"))
def multihead_critic_forward(x, params, *, batch_tile=512, compute_dtype=jnp.float32):
    """x: [B, encode_dim * num_heads] float32 -> [B, num_heads] float32."""
    w1, b1, w2, b2, w3, b3 = params
    B, d_in = x.shape
    d_h1 = w1.shape[1]          # 512
    d_h2 = w2.shape[1]          # 128
    d_out = w3.shape[1]         # num_heads

    use_bf16 = jnp.dtype(compute_dtype) == jnp.dtype(jnp.bfloat16)
    sub = 16 if use_bf16 else 8                 # sublane quantum per dtype

    # Batch tile: as large as requested, clamped to the (padded) batch,
    # rounded to the sublane quantum so block shapes stay legal.
    tile = max(sub, min(batch_tile, _round_up(B, sub)))
    tile = _round_up(tile, sub)
    B_pad = _round_up(B, tile)

    # Lane-dense output: pad the last layer to a multiple of 128 columns.
    d_out_pad = _round_up(d_out, 128)

    # --- wrapper-side layout / dtype plumbing (zero-padding is numerically inert) ---
    if B_pad != B:
        x = jnp.pad(x, ((0, B_pad - B), (0, 0)))
    if d_out_pad != d_out:
        w3 = jnp.pad(w3, ((0, 0), (0, d_out_pad - d_out)))
        b3 = jnp.pad(b3, ((0, 0), (0, d_out_pad - d_out)))

    xk = x.astype(compute_dtype)
    w1k = w1.astype(compute_dtype)
    w2k = w2.astype(compute_dtype)
    w3k = w3.astype(compute_dtype)
    # biases stay f32 (added after the f32-accumulated dot)

    grid = (B_pad // tile,)

    def x_map(i):
        return (i, 0)

    def param_map(i):
        return (0, 0)

    itemsize = jnp.dtype(compute_dtype).itemsize
    flops = 2 * B_pad * (d_in * d_h1 + d_h1 * d_h2 + d_h2 * d_out_pad)
    bytes_accessed = (
        B_pad * d_in * itemsize
        + (d_in * d_h1 + d_h1 * d_h2 + d_h2 * d_out_pad) * itemsize
        + (d_h1 + d_h2 + d_out_pad) * 4
        + B_pad * d_out_pad * 4
    )

    out_pad = pl.pallas_call(
        _mlp_kernel,
        out_shape=jax.ShapeDtypeStruct((B_pad, d_out_pad), jnp.float32),
        grid=grid,
        in_specs=[
            pl.BlockSpec((tile, d_in), x_map),
            pl.BlockSpec((d_in, d_h1), param_map),
            pl.BlockSpec((1, d_h1), param_map),
            pl.BlockSpec((d_h1, d_h2), param_map),
            pl.BlockSpec((1, d_h2), param_map),
            pl.BlockSpec((d_h2, d_out_pad), param_map),
            pl.BlockSpec((1, d_out_pad), param_map),
        ],
        out_specs=pl.BlockSpec((tile, d_out_pad), x_map),
        compiler_params=pltpu.CompilerParams(
            dimension_semantics=("parallel",),   # batch grid shards across TCs (v7x)
            vmem_limit_bytes=32 * 1024 * 1024,   # v5e scoped default is only 16 MiB
        ),
        cost_estimate=pl.CostEstimate(
            flops=flops, transcendentals=0, bytes_accessed=bytes_accessed
        ),
    )(xk, w1k, b1, w2k, b2, w3k, b3)

    # Undo wrapper-side padding.
    return out_pad[:B, :d_out]


def init_params(key, encode_dim, num_heads):
    """Deterministic synthetic init matching nn.Linear shapes (stored [in, out])."""
    d_in = encode_dim * num_heads
    dims = [(d_in, 512), (512, 128), (128, num_heads)]
    params = []
    for fan_in, fan_out in dims:
        kw, kb, key = jax.random.split(key, 3)
        bound = 1.0 / jnp.sqrt(fan_in)
        w = jax.random.uniform(kw, (fan_in, fan_out), jnp.float32, -bound, bound)
        b = jax.random.uniform(kb, (1, fan_out), jnp.float32, -bound, bound)
        params += [w, b]
    return tuple(params)


def reference_forward(x, params):
    w1, b1, w2, b2, w3, b3 = params
    h1 = jnp.maximum(x @ w1 + b1, 0.0)
    h2 = jnp.maximum(h1 @ w2 + b2, 0.0)
    return h2 @ w3 + b3


if __name__ == "__main__":
    encode_dim = 32
    num_heads = 4
    batch = 16

    key = jax.random.PRNGKey(0)
    kx, kp = jax.random.split(key)
    x = jax.random.normal(kx, (batch, encode_dim * num_heads), jnp.float32)
    params = init_params(kp, encode_dim, num_heads)

    ref = reference_forward(x, params)

    # f32 compute path (exact module semantics on all TPU generations).
    out = multihead_critic_forward(x, params)
    out = jax.block_until_ready(out)
    assert out.shape == (batch, num_heads)
    assert jnp.allclose(out, ref, atol=1e-4, rtol=1e-4)

    # bf16-input / f32-accumulate fast path (v6e / v7x MXU); looser tolerance.
    out_bf16 = multihead_critic_forward(x, params, compute_dtype=jnp.bfloat16)
    out_bf16 = jax.block_until_ready(out_bf16)
    assert out_bf16.shape == (batch, num_heads)
    assert jnp.allclose(out_bf16, ref, atol=3e-2, rtol=3e-2)

    print("KERNEL_OK")
</pallas_src>

<mosaic_0001>
module attributes {stable_mosaic.version = 11 : i64} {
  func.func @_mlp_kernel(%arg0: i32, %arg1: memref<16x128xf32, #tpu.memory_space<vmem>>, %arg2: memref<128x512xf32, #tpu.memory_space<vmem>>, %arg3: memref<1x512xf32, #tpu.memory_space<vmem>>, %arg4: memref<512x128xf32, #tpu.memory_space<vmem>>, %arg5: memref<1x128xf32, #tpu.memory_space<vmem>>, %arg6: memref<128x128xf32, #tpu.memory_space<vmem>>, %arg7: memref<1x128xf32, #tpu.memory_space<vmem>>, %arg8: memref<16x128xf32, #tpu.memory_space<vmem>>) attributes {dimension_semantics = [#tpu.dimension_semantics<parallel>], iteration_bounds = array<i64: 1>, scalar_prefetch = 0 : i64, scratch_operands = 0 : i64, tpu.core_type = #tpu.core_type<tc>, window_params = [{transform_indices = @transform_0, window_bounds = array<i64: 16, 128>}, {pipeline_mode = #tpu.pipeline_mode<synchronous>, transform_indices = @transform_1, window_bounds = array<i64: 128, 512>}, {pipeline_mode = #tpu.pipeline_mode<synchronous>, transform_indices = @transform_2, window_bounds = array<i64: 1, 512>}, {pipeline_mode = #tpu.pipeline_mode<synchronous>, transform_indices = @transform_3, window_bounds = array<i64: 512, 128>}, {pipeline_mode = #tpu.pipeline_mode<synchronous>, transform_indices = @transform_4, window_bounds = array<i64: 1, 128>}, {pipeline_mode = #tpu.pipeline_mode<synchronous>, transform_indices = @transform_5, window_bounds = array<i64: 128, 128>}, {pipeline_mode = #tpu.pipeline_mode<synchronous>, transform_indices = @transform_6, window_bounds = array<i64: 1, 128>}, {transform_indices = @transform_7, window_bounds = array<i64: 16, 128>}]} {
    %c0 = arith.constant 0 : index
    %c0_0 = arith.constant 0 : index
    %0 = vector.load %arg1[%c0, %c0_0] : memref<16x128xf32, #tpu.memory_space<vmem>>, vector<16x128xf32>
    %c0_1 = arith.constant 0 : index
    %c0_2 = arith.constant 0 : index
    %1 = vector.load %arg3[%c0_1, %c0_2] : memref<1x512xf32, #tpu.memory_space<vmem>>, vector<1x512xf32>
    %c0_3 = arith.constant 0 : index
    %c0_4 = arith.constant 0 : index
    %2 = vector.load %arg5[%c0_3, %c0_4] : memref<1x128xf32, #tpu.memory_space<vmem>>, vector<1x128xf32>
    %c0_5 = arith.constant 0 : index
    %c0_6 = arith.constant 0 : index
    %3 = vector.load %arg7[%c0_5, %c0_6] : memref<1x128xf32, #tpu.memory_space<vmem>>, vector<1x128xf32>
    %c0_7 = arith.constant 0 : index
    %c0_8 = arith.constant 0 : index
    %4 = vector.load %arg2[%c0_7, %c0_8] : memref<128x512xf32, #tpu.memory_space<vmem>>, vector<128x512xf32>
    %cst = arith.constant dense<0.000000e+00> : vector<16x512xf32>
    %5 = tpu.matmul %0, %4, %cst {dimension_numbers = #tpu.dot_dimension_numbers<[1], [0], [0], [1], [0, 0, 1, 1], [], []>} : vector<16x128xf32>, vector<128x512xf32>, vector<16x512xf32> -> vector<16x512xf32>
    %6 = vector.broadcast %1 : vector<1x512xf32> to vector<16x512xf32>
    %7 = arith.addf %5, %6 : vector<16x512xf32>
    %cst_9 = arith.constant 0.000000e+00 : f32
    %8 = vector.broadcast %cst_9 : f32 to vector<16x512xf32>
    %9 = arith.maximumf %7, %8 : vector<16x512xf32>
    %c0_10 = arith.constant 0 : index
    %c0_11 = arith.constant 0 : index
    %10 = vector.load %arg4[%c0_10, %c0_11] : memref<512x128xf32, #tpu.memory_space<vmem>>, vector<512x128xf32>
    %cst_12 = arith.constant dense<0.000000e+00> : vector<16x128xf32>
    %11 = tpu.matmul %9, %10, %cst_12 {dimension_numbers = #tpu.dot_dimension_numbers<[1], [0], [0], [1], [0, 0, 1, 1], [], []>} : vector<16x512xf32>, vector<512x128xf32>, vector<16x128xf32> -> vector<16x128xf32>
    %12 = vector.broadcast %2 : vector<1x128xf32> to vector<16x128xf32>
    %13 = arith.addf %11, %12 : vector<16x128xf32>
    %cst_13 = arith.constant 0.000000e+00 : f32
    %14 = vector.broadcast %cst_13 : f32 to vector<16x128xf32>
    %15 = arith.maximumf %13, %14 : vector<16x128xf32>
    %c0_14 = arith.constant 0 : index
    %c0_15 = arith.constant 0 : index
    %16 = vector.load %arg6[%c0_14, %c0_15] : memref<128x128xf32, #tpu.memory_space<vmem>>, vector<128x128xf32>
    %cst_16 = arith.constant dense<0.000000e+00> : vector<16x128xf32>
    %17 = tpu.matmul %15, %16, %cst_16 {dimension_numbers = #tpu.dot_dimension_numbers<[1], [0], [0], [1], [0, 0, 1, 1], [], []>} : vector<16x128xf32>, vector<128x128xf32>, vector<16x128xf32> -> vector<16x128xf32>
    %18 = vector.broadcast %3 : vector<1x128xf32> to vector<16x128xf32>
    %19 = arith.addf %17, %18 : vector<16x128xf32>
    %c0_17 = arith.constant 0 : index
    %c0_18 = arith.constant 0 : index
    %20 = vector.load %arg8[%c0_17, %c0_18] : memref<16x128xf32, #tpu.memory_space<vmem>>, vector<16x128xf32>
    tpu.vector_store %arg8[%c0_17, %c0_18], %19 {strides = array<i32>} : memref<16x128xf32, #tpu.memory_space<vmem>>, vector<16x128xf32>,
    return
  }
  func.func @transform_0(%arg0: i32) -> (i32, i32) {
    %c0_i32 = arith.constant 0 : i32
    %c0_i32_0 = arith.constant 0 : i32
    return %arg0, %c0_i32 : i32, i32
  }
  func.func @transform_1(%arg0: i32) -> (i32, i32) {
    %c0_i32 = arith.constant 0 : i32
    %c0_i32_0 = arith.constant 0 : i32
    %c0_i32_1 = arith.constant 0 : i32
    return %c0_i32, %c0_i32_0 : i32, i32
  }
  func.func @transform_2(%arg0: i32) -> (i32, i32) {
    %c0_i32 = arith.constant 0 : i32
    %c0_i32_0 = arith.constant 0 : i32
    %c0_i32_1 = arith.constant 0 : i32
    return %c0_i32, %c0_i32_0 : i32, i32
  }
  func.func @transform_3(%arg0: i32) -> (i32, i32) {
    %c0_i32 = arith.constant 0 : i32
    %c0_i32_0 = arith.constant 0 : i32
    %c0_i32_1 = arith.constant 0 : i32
    return %c0_i32, %c0_i32_0 : i32, i32
  }
  func.func @transform_4(%arg0: i32) -> (i32, i32) {
    %c0_i32 = arith.constant 0 : i32
    %c0_i32_0 = arith.constant 0 : i32
    %c0_i32_1 = arith.constant 0 : i32
    return %c0_i32, %c0_i32_0 : i32, i32
  }
  func.func @transform_5(%arg0: i32) -> (i32, i32) {
    %c0_i32 = arith.constant 0 : i32
    %c0_i32_0 = arith.constant 0 : i32
    %c0_i32_1 = arith.constant 0 : i32
    return %c0_i32, %c0_i32_0 : i32, i32
  }
  func.func @transform_6(%arg0: i32) -> (i32, i32) {
    %c0_i32 = arith.constant 0 : i32
    %c0_i32_0 = arith.constant 0 : i32
    %c0_i32_1 = arith.constant 0 : i32
    return %c0_i32, %c0_i32_0 : i32, i32
  }
  func.func @transform_7(%arg0: i32) -> (i32, i32) {
    %c0_i32 = arith.constant 0 : i32
    %c0_i32_0 = arith.constant 0 : i32
    return %arg0, %c0_i32 : i32, i32
  }
}

</mosaic_0001>

<bundles_post_ra>
// kernel: multihead_critic_forward.1
= control target key start
LH: loop header
LB: loop body
LE: loop exit
PB: predicated region body
PF: predicated region fallthrough
CT: control target
= control target key end

     0   :  { %12 = vsyncpa [#allocation3], 0  ;;  %s1123_s0 = inlined_call_operand.vmem [shape: f32[16,128], index: 0, kind: input, shape index: {}]   ;;  %s1124_s1 = inlined_call_operand.hbm [shape: f32[128,512], index: 1, kind: input, shape index: {}]   ;;  %s1125_s2 = inlined_call_operand.vmem [shape: f32[1,512], index: 2, kind: input, shape index: {}]   ;;  %s1126_s3 = inlined_call_operand.hbm [shape: f32[512,128], index: 3, kind: input, shape index: {}]   ;;  %s1127_s4 = inlined_call_operand.vmem [shape: f32[1,128], index: 4, kind: input, shape index: {}]   ;;  %s1128_s5 = inlined_call_operand.vmem [shape: f32[128,128], index: 5, kind: input, shape index: {}]   ;;  %s1129_s6 = inlined_call_operand.vmem [shape: f32[1,128], index: 6, kind: input, shape index: {}]   ;;  %s1130_s7 = inlined_call_operand.vmem [shape: f32[16,128], index: 7, kind: output, shape index: {}]  }
   0x1   :  { %13 = vsyncpa [#allocation5], 0  ;;  %s979_s24 = smov [#allocation2]   ;;  %s931_s28 = scalar_lea.hbm %s1124_s1, 8192 }
   0x2   :  { %s21_s25 = sshll.u32 %s979_s24, 4  ;;  %p932_p0 = scmp.ne.s32.totalorder %s1124_s1, %s931_s28  ;;  %s22_s25 = int_to_ptr.vmem [resolvable:$true] %s21_s25 }
   0x3   :  { %p935_p1 = scmp.lt.u32.totalorder %s931_s28, %s1124_s1 }
   0x5   :  { %p937_p2 = pnand %p935_p1, %p932_p0 }
   0x7   :  { %940 = shalt.err (!%p937_p2)
}
   0x8   :  { %s941_s10 = scalar_lea.vmem %s22_s25, 8192  ;;  %p946_p4 = scmp.lt.s32.totalorder %s22_s25, %s22_s25 }
   0x9   :  { %p942_p3 = scmp.ne.s32.totalorder %s22_s25, %s941_s10  ;;  %p947_p5 = scmp.lt.s32.totalorder %s941_s10, %s941_s10 }
   0xb   :  { %p948_p6 = por %p947_p5, %p946_p4 }
   0xd   :  { %p949_p7 = pnand %p948_p6, %p942_p3 }
   0xf   :  { %952 = shalt.err (!%p949_p7)
}
  0x10   :  { %s980_s11 = smov 512   ;;  %s981_s12 = smov 32  }
  0x11   :  { %27 = dma.hbm_to_vmem [thread:$0]  %s1124_s1, 8192, %s22_s25, [#allocation3], %s980_s11, %s980_s11, %s981_s12  }
  0x12   :  { %s982_s15 = smov [#allocation4]   ;;  %s953_s19 = scalar_lea.hbm %s1126_s3, 8192 }
  0x13   :  { %s35_s16 = sshll.u32 %s982_s15, 4  ;;  %p954_p8 = scmp.ne.s32.totalorder %s1126_s3, %s953_s19  ;;  %s36_s16 = int_to_ptr.vmem [resolvable:$true] %s35_s16 }
  0x14   :  { %p957_p9 = scmp.lt.u32.totalorder %s953_s19, %s1126_s3 }
  0x16   :  { %p959_p10 = pnand %p957_p9, %p954_p8 }
  0x18   :  { %962 = shalt.err (!%p959_p10)
}
  0x19   :  { %s963_s24 = scalar_lea.vmem %s36_s16, 8192  ;;  %p968_p12 = scmp.lt.s32.totalorder %s36_s16, %s36_s16 }
  0x1a   :  { %p964_p11 = scmp.ne.s32.totalorder %s36_s16, %s963_s24  ;;  %p969_p13 = scmp.lt.s32.totalorder %s963_s24, %s963_s24 }
  0x1c   :  { %p970_p0 = por %p969_p13, %p968_p12 }
  0x1e   :  { %p971_p1 = pnand %p970_p0, %p964_p11 }
  0x20   :  { %974 = shalt.err (!%p971_p1)
}
  0x21   :  { %s983_s1 = smov 128   ;;  %s984_s25 = smov 8  }
  0x22   :  { %41 = dma.hbm_to_vmem [thread:$0]  %s1126_s3, 8192, %s36_s16, [#allocation5], %s983_s1, %s983_s1, %s984_s25  }
  0x23   :  { %975 = dma.done.wait [#allocation3], 8192  }
  0x24   :  { %976 = vsyncadd [#allocation3], 4294959104 }
  0x25   :  { %977 = dma.done.wait [#allocation5], 8192  }
  0x26   :  { %978 = vsyncadd [#allocation5], 4294959104  ;;  %v985_v0 = vmov 0.0   ;;  %v60_v1 = vld [vmem:[#allocation2 + $0x8] sm:$0xff]  ;;  %v62_v3 = vld [vmem:[#allocation2 + $0x18] sm:$0xff] }
  0x27   :  { %208 = vmatprep.mubr.f32.mxu0 %v985_v0  ;;  %285 = vmatprep.mubr.f32.mxu1 %v985_v0  ;;  %v64_v2 = vld [vmem:[#allocation2 + $0x28] sm:$0xff]  ;;  %v66_v5 = vld [vmem:[#allocation2 + $0x38] sm:$0xff]  ;;  %v59_v6 = vld [vmem:[#allocation2] sm:$0xff] }
  0x28   :  { %v764_v4 = vpack.c.bf16 %v64_v2, %v60_v1  ;;  %v63_v7 = vld [vmem:[#allocation2 + $0x20] sm:$0xff]  ;;  %v796_v8 = vpack.c.bf16 %v66_v5, %v62_v3  ;;  %v61_v10 = vld [vmem:[#allocation2 + $0x10] sm:$0xff]  ;;  %v68_v12 = vld [vmem:[#allocation2 + $0x48] sm:$0xff] }
  0x29   :  { %v766_v9 = vpack.c.bf16 %v63_v7, %v59_v6  ;;  %v65_v11 = vld [vmem:[#allocation2 + $0x30] sm:$0xff]  ;;  %v72_v14 = vld [vmem:[#allocation2 + $0x68] sm:$0xff]  ;;  %v70_v15 = vld [vmem:[#allocation2 + $0x58] sm:$0xff] }
  0x2a   :  { %765 = vmatprep.subr.bf16.mxu0 %v764_v4  ;;  %v798_v13 = vpack.c.bf16 %v65_v11, %v61_v10  ;;  %v74_v16 = vld [vmem:[#allocation2 + $0x78] sm:$0xff]  ;;  %797 = vmatprep.subr.bf16.mxu1 %v796_v8  ;;  %v768_v17 = vpack.c.bf16 %v72_v14, %v68_v12  ;;  %v67_v19 = vld [vmem:[#allocation2 + $0x40] sm:$0xff]  ;;  %v69_v21 = vld [vmem:[#allocation2 + $0x50] sm:$0xff] }
  0x2b   :  { %767 = vmatpush1.bf16.msra.mxu0 %v766_v9  ;;  %v800_v18 = vpack.c.bf16 %v74_v16, %v70_v15  ;;  %v71_v20 = vld [vmem:[#allocation2 + $0x60] sm:$0xff]  ;;  %v73_v23 = vld [vmem:[#allocation2 + $0x70] sm:$0xff]  ;;  %v76_v24 = vld [vmem:[#allocation2 + $0x88] sm:$0xff] }
  0x2c   :  { %799 = vmatpush1.bf16.msra.mxu1 %v798_v13  ;;  %v770_v22 = vpack.c.bf16 %v71_v20, %v67_v19  ;;  %v80_v25 = vld [vmem:[#allocation2 + $0xa8] sm:$0xff]  ;;  %769 = vmatprep.subr.bf16.mxu0 %v768_v17  ;;  %v802_v26 = vpack.c.bf16 %v73_v23, %v69_v21  ;;  %v78_v28 = vld [vmem:[#allocation2 + $0x98] sm:$0xff]  ;;  %v75_v30 = vld [vmem:[#allocation2 + $0x80] sm:$0xff] }
  0x2d   :  { %801 = vmatprep.subr.bf16.mxu1 %v800_v18  ;;  %v772_v27 = vpack.c.bf16 %v80_v25, %v76_v24  ;;  %v82_v29 = vld [vmem:[#allocation2 + $0xb8] sm:$0xff]  ;;  %v79_v32 = vld [vmem:[#allocation2 + $0xa0] sm:$0xff]  ;;  %v77_v33 = vld [vmem:[#allocation2 + $0x90] sm:$0xff] }
  0x2e   :  { %v804_v31 = vpack.c.bf16 %v82_v29, %v78_v28  ;;  %v81_v34 = vld [vmem:[#allocation2 + $0xb0] sm:$0xff]  ;;  %v774_v35 = vpack.c.bf16 %v79_v32, %v75_v30  ;;  %v84_v36 = vld [vmem:[#allocation2 + $0xc8] sm:$0xff]  ;;  %v86_v38 = vld [vmem:[#allocation2 + $0xd8] sm:$0xff] }
  0x2f   :  { %771 = vmatpush1.bf16.msra.mxu0 %v770_v22  ;;  %v88_v37 = vld [vmem:[#allocation2 + $0xe8] sm:$0xff]  ;;  %v806_v39 = vpack.c.bf16 %v81_v34, %v77_v33  ;;  %v90_v41 = vld [vmem:[#allocation2 + $0xf8] sm:$0xff]  ;;  %v83_v42 = vld [vmem:[#allocation2 + $0xc0] sm:$0xff] }
  0x30   :  { %803 = vmatpush1.bf16.msra.mxu1 %v802_v26  ;;  %773 = vmatprep.subr.bf16.mxu0 %v772_v27  ;;  %v776_v40 = vpack.c.bf16 %v88_v37, %v84_v36  ;;  %v87_v43 = vld [vmem:[#allocation2 + $0xe0] sm:$0xff]  ;;  %v808_v44 = vpack.c.bf16 %v90_v41, %v86_v38  ;;  %v85_v45 = vld [vmem:[#allocation2 + $0xd0] sm:$0xff]  ;;  %v92_v47 = vld [vmem:[#allocation2 + $0x108] sm:$0xff] }
  0x31   :  { %805 = vmatprep.subr.bf16.mxu1 %v804_v31  ;;  %v89_v46 = vld [vmem:[#allocation2 + $0xf0] sm:$0xff]  ;;  %v96_v48 = vld [vmem:[#allocation2 + $0x128] sm:$0xff]  ;;  %v94_v49 = vld [vmem:[#allocation2 + $0x118] sm:$0xff]  ;;  %v778_v51 = vpack.c.bf16 %v87_v43, %v83_v42 }
  0x32   :  { %v98_v50 = vld [vmem:[#allocation2 + $0x138] sm:$0xff]  ;;  %v810_v52 = vpack.c.bf16 %v89_v46, %v85_v45  ;;  %v780_v53 = vpack.c.bf16 %v96_v48, %v92_v47  ;;  %v91_v54 = vld [vmem:[#allocation2 + $0x100] sm:$0xff]  ;;  %v93_v56 = vld [vmem:[#allocation2 + $0x110] sm:$0xff] }
  0x33   :  { %775 = vmatpush1.bf16.msra.mxu0 %v774_v35  ;;  %v95_v55 = vld [vmem:[#allocation2 + $0x120] sm:$0xff]  ;;  %v812_v57 = vpack.c.bf16 %v98_v50, %v94_v49  ;;  %v97_v58 = vld [vmem:[#allocation2 + $0x130] sm:$0xff]  ;;  %v100_v59 = vld [vmem:[#allocation2 + $0x148] sm:$0xff] }
  0x34   :  { %807 = vmatpush1.bf16.msra.mxu1 %v806_v39  ;;  %777 = vmatprep.subr.bf16.mxu0 %v776_v40  ;;  %v104_v60 = vld [vmem:[#allocation2 + $0x168] sm:$0xff]  ;;  %v102_v61 = vld [vmem:[#allocation2 + $0x158] sm:$0xff]  ;;  %v782_v63 = vpack.c.bf16 %v95_v55, %v91_v54  ;;  %v814_v1 = vpack.c.bf16 %v97_v58, %v93_v56  ;;  %v99_v3 = vld [vmem:[#allocation2 + $0x140] sm:$0xff] }
  0x35   :  { %809 = vmatprep.subr.bf16.mxu1 %v808_v44  ;;  %v106_v62 = vld [vmem:[#allocation2 + $0x178] sm:$0xff]  ;;  %v784_v2 = vpack.c.bf16 %v104_v60, %v100_v59  ;;  %v103_v4 = vld [vmem:[#allocation2 + $0x160] sm:$0xff]  ;;  %v101_v5 = vld [vmem:[#allocation2 + $0x150] sm:$0xff] }
  0x36   :  { %v816_v6 = vpack.c.bf16 %v106_v62, %v102_v61  ;;  %v105_v7 = vld [vmem:[#allocation2 + $0x170] sm:$0xff]  ;;  %v108_v8 = vld [vmem:[#allocation2 + $0x188] sm:$0xff]  ;;  %v110_v10 = vld [vmem:[#allocation2 + $0x198] sm:$0xff]  ;;  %v786_v12 = vpack.c.bf16 %v103_v4, %v99_v3 }
  0x37   :  { %779 = vmatpush1.bf16.msra.mxu0 %v778_v51  ;;  %v112_v9 = vld [vmem:[#allocation2 + $0x1a8] sm:$0xff]  ;;  %v114_v11 = vld [vmem:[#allocation2 + $0x1b8] sm:$0xff]  ;;  %v818_v13 = vpack.c.bf16 %v105_v7, %v101_v5  ;;  %v107_v15 = vld [vmem:[#allocation2 + $0x180] sm:$0xff] }
  0x38   :  { %811 = vmatpush1.bf16.msra.mxu1 %v810_v52  ;;  %781 = vmatprep.subr.bf16.mxu0 %v780_v53  ;;  %v788_v14 = vpack.c.bf16 %v112_v9, %v108_v8  ;;  %v111_v16 = vld [vmem:[#allocation2 + $0x1a0] sm:$0xff]  ;;  %v109_v17 = vld [vmem:[#allocation2 + $0x190] sm:$0xff]  ;;  %v820_v18 = vpack.c.bf16 %v114_v11, %v110_v10  ;;  %v116_v20 = vld [vmem:[#allocation2 + $0x1c8] sm:$0xff] }
  0x39   :  { %813 = vmatprep.subr.bf16.mxu1 %v812_v57  ;;  %v113_v19 = vld [vmem:[#allocation2 + $0x1b0] sm:$0xff]  ;;  %v120_v21 = vld [vmem:[#allocation2 + $0x1e8] sm:$0xff]  ;;  %v118_v22 = vld [vmem:[#allocation2 + $0x1d8] sm:$0xff]  ;;  %v790_v24 = vpack.c.bf16 %v111_v16, %v107_v15 }
  0x3a   :  { %v122_v23 = vld [vmem:[#allocation2 + $0x1f8] sm:$0xff]  ;;  %v822_v25 = vpack.c.bf16 %v113_v19, %v109_v17  ;;  %v792_v26 = vpack.c.bf16 %v120_v21, %v116_v20  ;;  %v115_v27 = vld [vmem:[#allocation2 + $0x1c0] sm:$0xff]  ;;  %v117_v29 = vld [vmem:[#allocation2 + $0x1d0] sm:$0xff] }
  0x3b   :  { %783 = vmatpush1.bf16.msra.mxu0 %v782_v63  ;;  %v119_v28 = vld [vmem:[#allocation2 + $0x1e0] sm:$0xff]  ;;  %v824_v30 = vpack.c.bf16 %v122_v23, %v118_v22  ;;  %v121_v31 = vld [vmem:[#allocation2 + $0x1f0] sm:$0xff]  ;;  %v323_v33 = vld [vmem:[#allocation4 + $0x88] sm:$0xff] }
  0x3c   :  { %815 = vmatpush1.bf16.msra.mxu1 %v814_v1  ;;  %785 = vmatprep.subr.bf16.mxu0 %v784_v2  ;;  %v322_v32 = vld [vmem:[#allocation4 + $0x80] sm:$0xff]  ;;  %v355_v35 = vld [vmem:[#allocation4 + $0x188] sm:$0xff]  ;;  %v794_v36 = vpack.c.bf16 %v119_v28, %v115_v27  ;;  %v826_v37 = vpack.c.bf16 %v121_v31, %v117_v29  ;;  %v324_v44 = vld [vmem:[#allocation4 + $0x90] sm:$0xff] }
  0x3d   :  { %817 = vmatprep.subr.bf16.mxu1 %v816_v6  ;;  %v354_v34 = vld [vmem:[#allocation4 + $0x180] sm:$0xff]  ;;  %v828_v38 = vpack.c.bf16 %v323_v33, %v322_v32  ;;  %v307_v41 = vld [vmem:[#allocation4 + $0x8] sm:$0xff]  ;;  %v325_v45 = vld [vmem:[#allocation4 + $0x98] sm:$0xff] }
  0x3e   :  { %v860_v39 = vpack.c.bf16 %v355_v35, %v354_v34  ;;  %v306_v40 = vld [vmem:[#allocation4] sm:$0xff]  ;;  %v339_v43 = vld [vmem:[#allocation4 + $0x108] sm:$0xff]  ;;  %v356_v47 = vld [vmem:[#allocation4 + $0x190] sm:$0xff]  ;;  %v832_v51 = vpack.c.bf16 %v325_v45, %v324_v44 }
  0x3f   :  { %787 = vmatpush1.bf16.msra.mxu0 %v786_v12  ;;  %v338_v42 = vld [vmem:[#allocation4 + $0x100] sm:$0xff]  ;;  %v357_v48 = vld [vmem:[#allocation4 + $0x198] sm:$0xff]  ;;  %v830_v49 = vpack.c.bf16 %v307_v41, %v306_v40  ;;  %v308_v52 = vld [vmem:[#allocation4 + $0x10] sm:$0xff] }
  0x40   :  { %819 = vmatpush1.bf16.msra.mxu1 %v818_v13  ;;  %789 = vmatprep.subr.bf16.mxu0 %v788_v14  ;;  %v54_v46 = vld [vmem:[%s1123_s0] sm:$0xff]  ;;  %v862_v50 = vpack.c.bf16 %v339_v43, %v338_v42  ;;  %v309_v53 = vld [vmem:[#allocation4 + $0x18] sm:$0xff]  ;;  %v340_v54 = vld [vmem:[#allocation4 + $0x110] sm:$0xff]  ;;  %v864_v55 = vpack.c.bf16 %v357_v48, %v356_v47 }
  0x41   :  { %821 = vmatprep.subr.bf16.mxu1 %v820_v18  ;;  %v341_v56 = vld [vmem:[#allocation4 + $0x118] sm:$0xff]  ;;  %v326_v57 = vld [vmem:[#allocation4 + $0xa0] sm:$0xff]  ;;  %v327_v58 = vld [vmem:[#allocation4 + $0xa8] sm:$0xff]  ;;  %v834_v62 = vpack.c.bf16 %v309_v53, %v308_v52 }
  0x42   :  { %v55_v59 = vld [vmem:[%s1123_s0 + $0x8] sm:$0xff]  ;;  %v358_v60 = vld [vmem:[#allocation4 + $0x1a0] sm:$0xff]  ;;  %v866_v63 = vpack.c.bf16 %v341_v56, %v340_v54  ;;  %v836_v1 = vpack.c.bf16 %v327_v58, %v326_v57  ;;  %v328_v7 = vld [vmem:[#allocation4 + $0xb0] sm:$0xff] }
  0x43   :  { %791 = vmatpush1.bf16.msra.mxu0 %v790_v24  ;;  %v359_v61 = vld [vmem:[#allocation4 + $0x1a8] sm:$0xff]  ;;  %v310_v2 = vld [vmem:[#allocation4 + $0x20] sm:$0xff]  ;;  %v329_v8 = vld [vmem:[#allocation4 + $0xb8] sm:$0xff] }
  0x44   :  { %823 = vmatpush1.bf16.msra.mxu1 %v822_v25  ;;  %793 = vmatprep.subr.bf16.mxu0 %v792_v26  ;;  %v311_v3 = vld [vmem:[#allocation4 + $0x28] sm:$0xff]  ;;  %v342_v4 = vld [vmem:[#allocation4 + $0x120] sm:$0xff]  ;;  %v868_v5 = vpack.c.bf16 %v359_v61, %v358_v60  ;;  %v360_v9 = vld [vmem:[#allocation4 + $0x1b0] sm:$0xff]  ;;  %v840_v12 = vpack.c.bf16 %v329_v8, %v328_v7  ;;  %v124_v8 = vlaneseq }
  0x45   :  { %825 = vmatprep.subr.bf16.mxu1 %v824_v30  ;;  %v343_v6 = vld [vmem:[#allocation4 + $0x128] sm:$0xff]  ;;  %v361_v10 = vld [vmem:[#allocation4 + $0x1b8] sm:$0xff]  ;;  %v312_v13 = vld [vmem:[#allocation4 + $0x30] sm:$0xff] }
  0x46   :  { %v870_v11 = vpack.c.bf16 %v343_v6, %v342_v4  ;;  %v313_v14 = vld [vmem:[#allocation4 + $0x38] sm:$0xff]  ;;  %v344_v15 = vld [vmem:[#allocation4 + $0x130] sm:$0xff]  ;;  %v872_v16 = vpack.c.bf16 %v361_v10, %v360_v9  ;;  %v330_v18 = vld [vmem:[#allocation4 + $0xc0] sm:$0xff]  ;;  %v125_v9 = vshrl.u32 %v124_v8, 7 }
  0x47   :  { %795 = vmatpush1.bf16.msra.mxu0 %v794_v36  ;;  %v345_v17 = vld [vmem:[#allocation4 + $0x138] sm:$0xff]  ;;  %v331_v19 = vld [vmem:[#allocation4 + $0xc8] sm:$0xff]  ;;  %v362_v20 = vld [vmem:[#allocation4 + $0x1c0] sm:$0xff]  ;;  %v842_v22 = vpack.c.bf16 %v313_v14, %v312_v13 }
  0x48   :  { %827 = vmatpush1.bf16.msra.mxu1 %v826_v37  ;;  %829 = vmatprep.subr.bf16.mxu0 %v828_v38  ;;  %v363_v21 = vld [vmem:[#allocation4 + $0x1c8] sm:$0xff]  ;;  %v874_v23 = vpack.c.bf16 %v345_v17, %v344_v15  ;;  %v844_v24 = vpack.c.bf16 %v331_v19, %v330_v18  ;;  %v314_v25 = vld [vmem:[#allocation4 + $0x40] sm:$0xff]  ;;  %v332_v30 = vld [vmem:[#allocation4 + $0xd0] sm:$0xff]  ;;  %v126_v10 = vsub.s32 0, %v125_v9  ;;  %v138_v13 = vsub.s32 3, %v125_v9 }
  0x49   :  { %861 = vmatprep.subr.bf16.mxu1 %v860_v39  ;;  %v315_v26 = vld [vmem:[#allocation4 + $0x48] sm:$0xff]  ;;  %v346_v27 = vld [vmem:[#allocation4 + $0x140] sm:$0xff]  ;;  %v876_v28 = vpack.c.bf16 %v363_v21, %v362_v20  ;;  %v333_v31 = vld [vmem:[#allocation4 + $0xd8] sm:$0xff] }
  0x4a   :  { %209 = vmatmul.mubr.f32.vlgmr.msra.gmra.mrb[0].mxu0 %v54_v46  ;;  %v347_v29 = vld [vmem:[#allocation4 + $0x148] sm:$0xff]  ;;  %v364_v32 = vld [vmem:[#allocation4 + $0x1d0] sm:$0xff]  ;;  %v365_v33 = vld [vmem:[#allocation4 + $0x1d8] sm:$0xff]  ;;  %v846_v34 = vpack.c.bf16 %v315_v26, %v314_v25  ;;  %v848_v36 = vpack.c.bf16 %v333_v31, %v332_v30 }
  0x4b   :  { %286 = vmatmul.mubr.f32.vlgmr.msra.gmra.mrb[0].mxu1 %v54_v46  ;;  %214 = vmatprep.mubr.f32.mxu0 %v985_v0  ;;  %v878_v35 = vpack.c.bf16 %v347_v29, %v346_v27  ;;  %v316_v37 = vld [vmem:[#allocation4 + $0x50] sm:$0xff]  ;;  %v317_v38 = vld [vmem:[#allocation4 + $0x58] sm:$0xff]  ;;  %v880_v40 = vpack.c.bf16 %v365_v33, %v364_v32  ;;  %v334_v42 = vld [vmem:[#allocation4 + $0xe0] sm:$0xff] }
  0x4c   :  { %291 = vmatprep.mubr.f32.mxu1 %v985_v0  ;;  %831 = vmatpush3.bf16.msra.mxu0 %v830_v49  ;;  %v838_v0 = vpack.c.bf16 %v311_v3, %v310_v2  ;;  %v348_v39 = vld [vmem:[#allocation4 + $0x150] sm:$0xff]  ;;  %v349_v41 = vld [vmem:[#allocation4 + $0x158] sm:$0xff]  ;;  %v335_v43 = vld [vmem:[#allocation4 + $0xe8] sm:$0xff]  ;;  %v850_v46 = vpack.c.bf16 %v317_v38, %v316_v37 }
  0x4d   :  { %863 = vmatpush3.bf16.msra.mxu1 %v862_v50  ;;  %833 = vmatprep.subr.bf16.mxu0 %v832_v51  ;;  %v366_v44 = vld [vmem:[#allocation4 + $0x1e0] sm:$0xff]  ;;  %v367_v45 = vld [vmem:[#allocation4 + $0x1e8] sm:$0xff]  ;;  %v882_v47 = vpack.c.bf16 %v349_v41, %v348_v39  ;;  %v852_v48 = vpack.c.bf16 %v335_v43, %v334_v42  ;;  %v336_v56 = vld [vmem:[#allocation4 + $0xf0] sm:$0xff] }
  0x4e   :  { %215 = vmatmul.mubr.f32.gmra.mrb[2].mxu0 %v55_v59  ;;  %865 = vmatprep.subr.bf16.mxu1 %v864_v55  ;;  %v884_v49 = vpack.c.bf16 %v367_v45, %v366_v44  ;;  %v318_v50 = vld [vmem:[#allocation4 + $0x60] sm:$0xff]  ;;  %v319_v51 = vld [vmem:[#allocation4 + $0x68] sm:$0xff]  ;;  %v337_v57 = vld [vmem:[#allocation4 + $0xf8] sm:$0xff] }
  0x4f   :  { %292 = vmatmul.mubr.f32.gmra.mrb[2].mxu1 %v55_v59  ;;  %v350_v52 = vld [vmem:[#allocation4 + $0x160] sm:$0xff]  ;;  %v854_v53 = vpack.c.bf16 %v319_v51, %v318_v50  ;;  %v351_v54 = vld [vmem:[#allocation4 + $0x168] sm:$0xff]  ;;  %v368_v58 = vld [vmem:[#allocation4 + $0x1f0] sm:$0xff]  ;;  %v856_v59 = vpack.c.bf16 %v337_v57, %v336_v56 }
  0x50   :  { %835 = vmatpush3.bf16.msra.mxu0 %v834_v62  ;;  %v886_v55 = vpack.c.bf16 %v351_v54, %v350_v52  ;;  %v369_v60 = vld [vmem:[#allocation4 + $0x1f8] sm:$0xff]  ;;  %v320_v61 = vld [vmem:[#allocation4 + $0x70] sm:$0xff]  ;;  %v529_v6 = vld [vmem:[%s1128_s5 + $0x8] sm:$0xff] }
  0x51   :  { %867 = vmatpush3.bf16.msra.mxu1 %v866_v63  ;;  %837 = vmatprep.subr.bf16.mxu0 %v836_v1  ;;  %v321_v62 = vld [vmem:[#allocation4 + $0x78] sm:$0xff]  ;;  %v888_v63 = vpack.c.bf16 %v369_v60, %v368_v58  ;;  %v352_v2 = vld [vmem:[#allocation4 + $0x170] sm:$0xff]  ;;  %v533_v41 = vld [vmem:[%s1128_s5 + $0x28] sm:$0xff] }
  0x52   :  { %869 = vmatprep.subr.bf16.mxu1 %v868_v5  ;;  %v858_v1 = vpack.c.bf16 %v321_v62, %v320_v61  ;;  %v353_v3 = vld [vmem:[#allocation4 + $0x178] sm:$0xff]  ;;  %v528_v5 = vld [vmem:[%s1128_s5] sm:$0xff]  ;;  %v530_v25 = vld [vmem:[%s1128_s5 + $0x10] sm:$0xff] }
  0x53   :  { %v890_v4 = vpack.c.bf16 %v353_v3, %v352_v2  ;;  %v892_v7 = vpack.c.bf16 %v529_v6, %v528_v5  ;;  %v531_v26 = vld [vmem:[%s1128_s5 + $0x18] sm:$0xff]  ;;  %v536_v51 = vld [vmem:[%s1128_s5 + $0x40] sm:$0xff]  ;;  %v537_v52 = vld [vmem:[%s1128_s5 + $0x48] sm:$0xff] }
  0x54   :  { %839 = vmatpush3.bf16.msra.mxu0 %v838_v0  ;;  %v56_v0 = vld [vmem:[%s1125_s2] sm:$0xf]  ;;  %v538_v54 = vld [vmem:[%s1128_s5 + $0x50] sm:$0xff]  ;;  %v541_v58 = vld [vmem:[%s1128_s5 + $0x68] sm:$0xff] }
  0x55   :  { %871 = vmatpush3.bf16.msra.mxu1 %v870_v11  ;;  %841 = vmatprep.subr.bf16.mxu0 %v840_v12  ;;  %v134_v11 = vsub.s32 2, %v125_v9  ;;  %v130_v12 = vsub.s32 1, %v125_v9  ;;  %v127_v14 = vrot.slane %v56_v0, %v126_v10  ;;  %v139_v17 = vrot.slane %v56_v0, %v138_v13  ;;  %v540_v57 = vld [vmem:[%s1128_s5 + $0x60] sm:$0xff]  ;;  %v542_v60 = vld [vmem:[%s1128_s5 + $0x70] sm:$0xff]  ;;  %v543_v61 = vld [vmem:[%s1128_s5 + $0x78] sm:$0xff] }
  0x56   :  { %873 = vmatprep.subr.bf16.mxu1 %v872_v16  ;;  %v920_v62 = vpack.c.bf16 %v543_v61, %v542_v60  ;;  %v633_v2 = vld [vmem:[%s1127_s4] ss:$0 sm:$0xff] }
  0x57   :  { %v135_v15 = vrot.slane %v56_v0, %v134_v11  ;;  %v131_v16 = vrot.slane %v56_v0, %v130_v12 }
  0x58   :  { %843 = vmatpush3.bf16.msra.mxu0 %v842_v22 }
  0x59   :  { %875 = vmatpush3.bf16.msra.mxu1 %v874_v23  ;;  %845 = vmatprep.subr.bf16.mxu0 %v844_v24 }
  0x5a   :  { %877 = vmatprep.subr.bf16.mxu1 %v876_v28 }
  0x5c   :  { %847 = vmatpush3.bf16.msra.mxu0 %v846_v34 }
  0x5d   :  { %879 = vmatpush3.bf16.msra.mxu1 %v878_v35  ;;  %849 = vmatprep.subr.bf16.mxu0 %v848_v36  ;;  %v896_v36 = vpack.c.bf16 %v531_v26, %v530_v25 }
  0x5e   :  { %881 = vmatprep.subr.bf16.mxu1 %v880_v40  ;;  %v532_v40 = vld [vmem:[%s1128_s5 + $0x20] sm:$0xff] }
  0x60   :  { %851 = vmatpush3.bf16.msra.mxu0 %v850_v46 }
  0x61   :  { %883 = vmatpush3.bf16.msra.mxu1 %v882_v47  ;;  %853 = vmatprep.subr.bf16.mxu0 %v852_v48  ;;  %v900_v47 = vpack.c.bf16 %v533_v41, %v532_v40  ;;  %v534_v48 = vld [vmem:[%s1128_s5 + $0x30] sm:$0xff] }
  0x62   :  { %885 = vmatprep.subr.bf16.mxu1 %v884_v49  ;;  %v535_v49 = vld [vmem:[%s1128_s5 + $0x38] sm:$0xff] }
  0x63   :  { %v904_v50 = vpack.c.bf16 %v535_v49, %v534_v48 }
  0x64   :  { %855 = vmatpush3.bf16.msra.mxu0 %v854_v53  ;;  %v908_v53 = vpack.c.bf16 %v537_v52, %v536_v51 }
  0x65   :  { %887 = vmatpush3.bf16.msra.mxu1 %v886_v55  ;;  %857 = vmatprep.subr.bf16.mxu0 %v856_v59  ;;  %v539_v55 = vld [vmem:[%s1128_s5 + $0x58] sm:$0xff]  ;;  %v916_v59 = vpack.c.bf16 %v541_v58, %v540_v57 }
  0x66   :  { %889 = vmatprep.subr.bf16.mxu1 %v888_v63  ;;  %v912_v56 = vpack.c.bf16 %v539_v55, %v538_v54 }
  0x68   :  { %859 = vmatpush3.bf16.msra.mxu0 %v858_v1 }
  0x69   :  { %891 = vmatpush3.bf16.msra.mxu1 %v890_v4  ;;  %893 = vmatprep.subr.bf16.mxu0 %v892_v7 }
 0x11d   :  { %v210_v18 = vpop.f32.mrb[0].mxu0 }
 0x11e   :  { %v211_v19 = vadd.f32 %v210_v18, %v127_v14  ;;  %v287_v20 = vpop.f32.mrb[0].mxu1  ;;  %v212_v21 = vpop.f32.mrb[1].mxu0  ;;  %v634_v18 = vld [vmem:[%s1129_s6] ss:$0 sm:$0xff] }
 0x11f   :  { %v288_v22 = vadd.f32 %v287_v20, %v135_v15  ;;  %v213_v23 = vadd.f32 %v212_v21, %v131_v16  ;;  %v289_v24 = vpop.f32.mrb[1].mxu1 }
 0x120   :  { %v290_v27 = vadd.f32 %v289_v24, %v139_v17  ;;  %v298_v31 = vmax.f32 %v211_v19, 0.0 }
 0x121   :  { %v300_v28 = vmax.f32 %v288_v22, 0.0  ;;  %v299_v29 = vmax.f32 %v213_v23, 0.0  ;;  %v216_v30 = vpop.f32.mrb[2].mxu0 }
 0x122   :  { %v301_v32 = vmax.f32 %v290_v27, 0.0  ;;  %v217_v33 = vadd.f32 %v216_v30, %v127_v14  ;;  %v293_v34 = vpop.f32.mrb[2].mxu1  ;;  %v218_v35 = vpop.f32.mrb[3].mxu0 }
 0x123   :  { %v294_v37 = vadd.f32 %v293_v34, %v135_v15  ;;  %v219_v38 = vadd.f32 %v218_v35, %v131_v16  ;;  %v295_v39 = vpop.f32.mrb[3].mxu1  ;;  %440 = vmatprep.mubr.f32.mxu0 %v299_v29 }
 0x124   :  { %v296_v42 = vadd.f32 %v295_v39, %v139_v17  ;;  %515 = vmatprep.mubr.f32.mxu1 %v301_v32  ;;  %441 = vmatmul.mubr.f32.vlgmr.msra.gmra.mrb[4].mxu0 %v298_v31  ;;  %v302_v45 = vmax.f32 %v217_v33, 0.0 }
 0x125   :  { %v304_v43 = vmax.f32 %v294_v37, 0.0  ;;  %v303_v44 = vmax.f32 %v219_v38, 0.0  ;;  %516 = vmatmul.mubr.f32.vlgmr.msra.gmra.mrb[4].mxu1 %v300_v28  ;;  %895 = vmatpush3.bf16.msra.mxu0 %v892_v7 }
 0x126   :  { %v305_v46 = vmax.f32 %v296_v42, 0.0  ;;  %897 = vmatprep.subr.bf16.mxu0 %v896_v36 }
 0x127   :  { %445 = vmatprep.mubr.f32.mxu0 %v303_v44 }
 0x128   :  { %520 = vmatprep.mubr.f32.mxu1 %v305_v46  ;;  %446 = vmatmul.mubr.f32.gmra.mrb[6].mxu0 %v302_v45 }
 0x129   :  { %521 = vmatmul.mubr.f32.gmra.mrb[6].mxu1 %v304_v43  ;;  %899 = vmatpush3.bf16.msra.mxu0 %v896_v36 }
 0x12a   :  { %901 = vmatprep.subr.bf16.mxu0 %v900_v47 }
 0x12d   :  { %903 = vmatpush3.bf16.msra.mxu0 %v900_v47 }
 0x12e   :  { %905 = vmatprep.subr.bf16.mxu0 %v904_v50 }
 0x131   :  { %907 = vmatpush3.bf16.msra.mxu0 %v904_v50 }
 0x132   :  { %909 = vmatprep.subr.bf16.mxu0 %v908_v53 }
 0x135   :  { %911 = vmatpush3.bf16.msra.mxu0 %v908_v53 }
 0x136   :  { %913 = vmatprep.subr.bf16.mxu0 %v912_v56 }
 0x139   :  { %915 = vmatpush3.bf16.msra.mxu0 %v912_v56 }
 0x13a   :  { %917 = vmatprep.subr.bf16.mxu0 %v916_v59 }
 0x13d   :  { %919 = vmatpush3.bf16.msra.mxu0 %v916_v59 }
 0x13e   :  { %921 = vmatprep.subr.bf16.mxu0 %v920_v62 }
 0x141   :  { %923 = vmatpush3.bf16.msra.mxu0 %v920_v62 }
 0x1f7   :  { %v667_v63 = vpop.f32.mrb[4].mxu0 }
 0x1f8   :  { %v705_v1 = vpop.f32.mrb[4].mxu1  ;;  %v668_v3 = vpop.f32.mrb[5].mxu0 }
 0x1f9   :  { %v669_v4 = vadd.f32 %v668_v3, %v667_v63  ;;  %v706_v5 = vpop.f32.mrb[5].mxu1 }
 0x1fa   :  { %v707_v6 = vadd.f32 %v706_v5, %v705_v1 }
 0x1fb   :  { %v443_v7 = vadd.f32 %v669_v4, %v633_v2  ;;  %v670_v8 = vpop.f32.mrb[6].mxu0 }
 0x1fc   :  { %v708_v9 = vpop.f32.mrb[6].mxu1  ;;  %v671_v10 = vpop.f32.mrb[7].mxu0 }
 0x1fd   :  { %v518_v0 = vadd.f32 %v707_v6, %v443_v7  ;;  %v672_v11 = vadd.f32 %v671_v10, %v670_v8  ;;  %v709_v12 = vpop.f32.mrb[7].mxu1 }
 0x1fe   :  { %v710_v13 = vadd.f32 %v709_v12, %v708_v9 }
 0x1ff   :  { %v526_v14 = vmax.f32 %v518_v0, 0.0  ;;  %v448_v15 = vadd.f32 %v672_v11, %v633_v2 }
 0x201   :  { %v523_v16 = vadd.f32 %v710_v13, %v448_v15  ;;  %761 = vmatprep.mubr.f32.mxu0 %v526_v14 }
 0x203   :  { %v527_v17 = vmax.f32 %v523_v16, 0.0 }
 0x205   :  { %762 = vmatmul.mubr.f32.vlgmr.msra.gmra.mrb[8].mxu0 %v527_v17 }
 0x2d8   :  { %v763_v19 = vpop.f32.mrb[8].mxu0 }
 0x2d9   :  { %v622_v20 = vadd.f32 %v763_v19, %v634_v18  ;;  %v616_v21 = vpop.f32.mrb[9].mxu0 }
 0x2da   :  { %v617_v22 = vadd.f32 %v634_v18, %v616_v21 }
 0x2db   :  { %626 = vst [vmem:[%s1130_s7 + $0x8] sm:$0xff] %v622_v20 }
 0x2dc   :  { %625 = vst [vmem:[%s1130_s7] sm:$0xff] %v617_v22 }
 0x2dd   :  { %631 = vsyncpa [#allocation3], 1 }
 0x2de   :  { %632 = vsyncpa [#allocation5], 1 }

</bundles_post_ra>
